<compile_context>
chip_gen: v7x
topology: tpu7x:2x2x1
jax: 0.10.0
libtpu: 0.0.40
codegen_flags: <defaults>
</compile_context>

<pallas_src>
import functools

import jax
import jax.numpy as jnp
from jax.experimental import pallas as pl
from jax.experimental.pallas import tpu as pltpu

MAX_TILE_B = 512   # batch rows per grid step (multiple of 256; amortizes ~0.35us/step)
LANES = 128        # pad tiny output-feature dim to one lane group for the MXU only


def mlp_kernel(x_ref, w1_ref, b1_ref, w2_ref, b2_ref, w3_ref, b3_ref, o_ref,
               *, act_out):
    # x arrives f32 from HBM; cast to bf16 in VMEM (no separate XLA cast pass).
    x = x_ref[...].astype(jnp.bfloat16)

    # Layer 1: bf16 MXU matmul, f32 accumulation; bias + tanh stay f32
    # (v5e VPU/EUP have no bf16 path).
    h1 = jnp.tanh(
        jnp.dot(x, w1_ref[...], preferred_element_type=jnp.float32) + b1_ref[...]
    )
    # Layer 2.
    h2 = jnp.tanh(
        jnp.dot(h1.astype(jnp.bfloat16), w2_ref[...],
                preferred_element_type=jnp.float32) + b2_ref[...]
    )
    # Output layer: matmul runs at lane-padded N (clean MXU shape); only the
    # real action columns are written back to HBM (padded cols never leave VMEM).
    y = (jnp.dot(h2.astype(jnp.bfloat16), w3_ref[...],
                 preferred_element_type=jnp.float32) + b3_ref[...])
    o_ref[...] = y[:, :act_out].astype(o_ref.dtype)


def torch_dense_forward(x_nchw, params):
    """x_nchw: (B, C, H, W) float32. params: dict of f32 weights/biases (in,out)."""
    B = x_nchw.shape[0]
    # torch.nn.Flatten(start_dim=1) element order == row-major reshape. Keep f32.
    x_flat = x_nchw.reshape(B, -1)

    w1 = params["w1"].astype(jnp.bfloat16)
    w2 = params["w2"].astype(jnp.bfloat16)
    w3 = params["w3"].astype(jnp.bfloat16)
    b1, b2, b3 = params["b1"], params["b2"], params["b3"]  # stay f32

    F = x_flat.shape[1]
    H1 = w1.shape[1]
    H2 = w2.shape[1]
    A = w3.shape[1]

    # Pad only the tiny last-layer weight/bias to one lane group (cheap, 128 KiB);
    # the kernel slices the result back to A before storing.
    A_pad = ((A + LANES - 1) // LANES) * LANES
    w3p = jnp.pad(w3, ((0, 0), (0, A_pad - A)))
    b3p = jnp.pad(b3, ((0, 0), (0, A_pad - A)))

    # Batch tiling without padding: either one block covering the whole batch
    # (block dim == full dim, always legal) or 512-row blocks with a partial
    # boundary block (512 divisible by 8, masked writeback for tail rows).
    tile_b = MAX_TILE_B if B > MAX_TILE_B else B
    nb = pl.cdiv(B, tile_b)

    cost = pl.CostEstimate(
        flops=2 * B * (F * H1 + H1 * H2 + H2 * A_pad),
        transcendentals=B * (H1 + H2),
        bytes_accessed=(x_flat.size * 4                         # f32 x read
                        + (w1.size + w2.size + w3p.size) * 2    # bf16 weights
                        + (b1.size + b2.size + b3p.size) * 4    # f32 biases
                        + B * A * 4),                           # f32 out
    )

    kernel = functools.partial(mlp_kernel, act_out=A)

    out = pl.pallas_call(
        kernel,
        out_shape=jax.ShapeDtypeStruct((B, A), jnp.float32),
        grid=(nb,),
        in_specs=[
            pl.BlockSpec((tile_b, F), lambda i: (i, 0)),   # x tile per grid step
            pl.BlockSpec((F, H1), lambda i: (0, 0)),       # weights: VMEM-resident
            pl.BlockSpec((1, H1), lambda i: (0, 0)),
            pl.BlockSpec((H1, H2), lambda i: (0, 0)),
            pl.BlockSpec((1, H2), lambda i: (0, 0)),
            pl.BlockSpec((H2, A_pad), lambda i: (0, 0)),
            pl.BlockSpec((1, A_pad), lambda i: (0, 0)),
        ],
        out_specs=pl.BlockSpec((tile_b, A), lambda i: (i, 0)),
        compiler_params=pltpu.CompilerParams(
            dimension_semantics=("parallel",),
            vmem_limit_bytes=32 << 20,
        ),
        cost_estimate=cost,
    )(x_flat, w1, b1, w2, b2, w3p, b3p)

    return out


def init_params(state_shape, action_size, key):
    """Deterministic init mimicking PyTorch nn.Linear default (uniform +-1/sqrt(fan_in)).
    Weights stored as (in, out) == transpose of PyTorch's (out, in)."""
    in_flat = 1
    for d in state_shape:
        in_flat *= d

    dims = [(in_flat, 256), (256, 256), (256, action_size)]
    params = {}
    keys = jax.random.split(key, 2 * len(dims))
    for i, (fan_in, fan_out) in enumerate(dims):
        bound = 1.0 / (fan_in ** 0.5)
        w = jax.random.uniform(
            keys[2 * i], (fan_in, fan_out), jnp.float32, -bound, bound
        )
        b = jax.random.uniform(
            keys[2 * i + 1], (1, fan_out), jnp.float32, -bound, bound
        )
        params[f"w{i + 1}"] = w
        params[f"b{i + 1}"] = b
    return params


if __name__ == "__main__":
    key = jax.random.PRNGKey(0)
    k_x, k_p = jax.random.split(key)

    # Small shapes consistent with the module: state_shape=(4,16,16), action_size=8.
    B, C, H, W = 2, 4, 16, 16
    action_size = 8
    state_shape = (C, H, W)

    x = jax.random.normal(k_x, (B, C, H, W), jnp.float32)
    params = init_params(state_shape, action_size, k_p)

    out = torch_dense_forward(x, params)
    out = jax.block_until_ready(out)
    assert out.shape == (B, action_size)

    # Pure-JAX reference of the same bf16-weight / f32-accumulate math.
    xf = x.reshape(B, -1).astype(jnp.bfloat16)
    w1 = params["w1"].astype(jnp.bfloat16)
    w2 = params["w2"].astype(jnp.bfloat16)
    w3 = params["w3"].astype(jnp.bfloat16)
    ref = jnp.tanh(jnp.dot(xf, w1, preferred_element_type=jnp.float32)
                   + params["b1"])
    ref = jnp.tanh(jnp.dot(ref.astype(jnp.bfloat16), w2,
                           preferred_element_type=jnp.float32) + params["b2"])
    ref = (jnp.dot(ref.astype(jnp.bfloat16), w3,
                   preferred_element_type=jnp.float32) + params["b3"])
    assert jnp.allclose(out, ref, atol=1e-3, rtol=1e-3)

    # Loose sanity check against the full-f32 module math (bf16 quantization error only).
    reff = jnp.tanh(x.reshape(B, -1) @ params["w1"] + params["b1"])
    reff = jnp.tanh(reff @ params["w2"] + params["b2"])
    reff = reff @ params["w3"] + params["b3"]
    assert jnp.allclose(out, reff, atol=5e-2, rtol=5e-2)

    print("KERNEL_OK")
</pallas_src>

<mosaic_0001>
module attributes {stable_mosaic.version = 11 : i64} {
  func.func @mlp_kernel(%arg0: i32, %arg1: memref<2x1024xf32, #tpu.memory_space<vmem>>, %arg2: memref<1024x256xbf16, #tpu.memory_space<vmem>>, %arg3: memref<1x256xf32, #tpu.memory_space<vmem>>, %arg4: memref<256x256xbf16, #tpu.memory_space<vmem>>, %arg5: memref<1x256xf32, #tpu.memory_space<vmem>>, %arg6: memref<256x128xbf16, #tpu.memory_space<vmem>>, %arg7: memref<1x128xf32, #tpu.memory_space<vmem>>, %arg8: memref<2x8xf32, #tpu.memory_space<vmem>>) attributes {dimension_semantics = [#tpu.dimension_semantics<parallel>], iteration_bounds = array<i64: 1>, scalar_prefetch = 0 : i64, scratch_operands = 0 : i64, tpu.core_type = #tpu.core_type<tc>, window_params = [{transform_indices = @transform_0, window_bounds = array<i64: 2, 1024>}, {pipeline_mode = #tpu.pipeline_mode<synchronous>, transform_indices = @transform_1, window_bounds = array<i64: 1024, 256>}, {pipeline_mode = #tpu.pipeline_mode<synchronous>, transform_indices = @transform_2, window_bounds = array<i64: 1, 256>}, {pipeline_mode = #tpu.pipeline_mode<synchronous>, transform_indices = @transform_3, window_bounds = array<i64: 256, 256>}, {pipeline_mode = #tpu.pipeline_mode<synchronous>, transform_indices = @transform_4, window_bounds = array<i64: 1, 256>}, {pipeline_mode = #tpu.pipeline_mode<synchronous>, transform_indices = @transform_5, window_bounds = array<i64: 256, 128>}, {pipeline_mode = #tpu.pipeline_mode<synchronous>, transform_indices = @transform_6, window_bounds = array<i64: 1, 128>}, {transform_indices = @transform_7, window_bounds = array<i64: 2, 8>}]} {
    %c0 = arith.constant 0 : index
    %c0_0 = arith.constant 0 : index
    %0 = vector.load %arg1[%c0, %c0_0] : memref<2x1024xf32, #tpu.memory_space<vmem>>, vector<2x1024xf32>
    %1 = arith.truncf %0 : vector<2x1024xf32> to vector<2x1024xbf16>
    %c0_1 = arith.constant 0 : index
    %c0_2 = arith.constant 0 : index
    %2 = vector.load %arg2[%c0_1, %c0_2] : memref<1024x256xbf16, #tpu.memory_space<vmem>>, vector<1024x256xbf16>
    %cst = arith.constant dense<0.000000e+00> : vector<2x256xf32>
    %3 = tpu.matmul %1, %2, %cst {dimension_numbers = #tpu.dot_dimension_numbers<[1], [0], [0], [1], [0, 0, 1, 1], [], []>} : vector<2x1024xbf16>, vector<1024x256xbf16>, vector<2x256xf32> -> vector<2x256xf32>
    %c0_3 = arith.constant 0 : index
    %c0_4 = arith.constant 0 : index
    %4 = vector.load %arg3[%c0_3, %c0_4] : memref<1x256xf32, #tpu.memory_space<vmem>>, vector<1x256xf32>
    %5 = vector.broadcast %4 : vector<1x256xf32> to vector<2x256xf32>
    %6 = arith.addf %3, %5 : vector<2x256xf32>
    %7 = math.tanh %6 : vector<2x256xf32>
    %8 = arith.truncf %7 : vector<2x256xf32> to vector<2x256xbf16>
    %c0_5 = arith.constant 0 : index
    %c0_6 = arith.constant 0 : index
    %9 = vector.load %arg4[%c0_5, %c0_6] : memref<256x256xbf16, #tpu.memory_space<vmem>>, vector<256x256xbf16>
    %cst_7 = arith.constant dense<0.000000e+00> : vector<2x256xf32>
    %10 = tpu.matmul %8, %9, %cst_7 {dimension_numbers = #tpu.dot_dimension_numbers<[1], [0], [0], [1], [0, 0, 1, 1], [], []>} : vector<2x256xbf16>, vector<256x256xbf16>, vector<2x256xf32> -> vector<2x256xf32>
    %c0_8 = arith.constant 0 : index
    %c0_9 = arith.constant 0 : index
    %11 = vector.load %arg5[%c0_8, %c0_9] : memref<1x256xf32, #tpu.memory_space<vmem>>, vector<1x256xf32>
    %12 = vector.broadcast %11 : vector<1x256xf32> to vector<2x256xf32>
    %13 = arith.addf %10, %12 : vector<2x256xf32>
    %14 = math.tanh %13 : vector<2x256xf32>
    %15 = arith.truncf %14 : vector<2x256xf32> to vector<2x256xbf16>
    %c0_10 = arith.constant 0 : index
    %c0_11 = arith.constant 0 : index
    %16 = vector.load %arg6[%c0_10, %c0_11] : memref<256x128xbf16, #tpu.memory_space<vmem>>, vector<256x128xbf16>
    %cst_12 = arith.constant dense<0.000000e+00> : vector<2x128xf32>
    %17 = tpu.matmul %15, %16, %cst_12 {dimension_numbers = #tpu.dot_dimension_numbers<[1], [0], [0], [1], [0, 0, 1, 1], [], []>} : vector<2x256xbf16>, vector<256x128xbf16>, vector<2x128xf32> -> vector<2x128xf32>
    %c0_13 = arith.constant 0 : index
    %c0_14 = arith.constant 0 : index
    %18 = vector.load %arg7[%c0_13, %c0_14] : memref<1x128xf32, #tpu.memory_space<vmem>>, vector<1x128xf32>
    %19 = vector.broadcast %18 : vector<1x128xf32> to vector<2x128xf32>
    %20 = arith.addf %17, %19 : vector<2x128xf32>
    %21 = vector.extract_strided_slice %20 {offsets = [0, 0], sizes = [2, 8], strides = [1, 1]} : vector<2x128xf32> to vector<2x8xf32>
    %c0_15 = arith.constant 0 : index
    %c0_16 = arith.constant 0 : index
    %22 = vector.load %arg8[%c0_15, %c0_16] : memref<2x8xf32, #tpu.memory_space<vmem>>, vector<2x8xf32>
    tpu.vector_store %arg8[%c0_15, %c0_16], %21 {strides = array<i32>} : memref<2x8xf32, #tpu.memory_space<vmem>>, vector<2x8xf32>,
    return
  }
  func.func @transform_0(%arg0: i32) -> (i32, i32) {
    %c0_i32 = arith.constant 0 : i32
    %c0_i32_0 = arith.constant 0 : i32
    return %arg0, %c0_i32 : i32, i32
  }
  func.func @transform_1(%arg0: i32) -> (i32, i32) {
    %c0_i32 = arith.constant 0 : i32
    %c0_i32_0 = arith.constant 0 : i32
    %c0_i32_1 = arith.constant 0 : i32
    return %c0_i32, %c0_i32_0 : i32, i32
  }
  func.func @transform_2(%arg0: i32) -> (i32, i32) {
    %c0_i32 = arith.constant 0 : i32
    %c0_i32_0 = arith.constant 0 : i32
    %c0_i32_1 = arith.constant 0 : i32
    return %c0_i32, %c0_i32_0 : i32, i32
  }
  func.func @transform_3(%arg0: i32) -> (i32, i32) {
    %c0_i32 = arith.constant 0 : i32
    %c0_i32_0 = arith.constant 0 : i32
    %c0_i32_1 = arith.constant 0 : i32
    return %c0_i32, %c0_i32_0 : i32, i32
  }
  func.func @transform_4(%arg0: i32) -> (i32, i32) {
    %c0_i32 = arith.constant 0 : i32
    %c0_i32_0 = arith.constant 0 : i32
    %c0_i32_1 = arith.constant 0 : i32
    return %c0_i32, %c0_i32_0 : i32, i32
  }
  func.func @transform_5(%arg0: i32) -> (i32, i32) {
    %c0_i32 = arith.constant 0 : i32
    %c0_i32_0 = arith.constant 0 : i32
    %c0_i32_1 = arith.constant 0 : i32
    return %c0_i32, %c0_i32_0 : i32, i32
  }
  func.func @transform_6(%arg0: i32) -> (i32, i32) {
    %c0_i32 = arith.constant 0 : i32
    %c0_i32_0 = arith.constant 0 : i32
    %c0_i32_1 = arith.constant 0 : i32
    return %c0_i32, %c0_i32_0 : i32, i32
  }
  func.func @transform_7(%arg0: i32) -> (i32, i32) {
    %c0_i32 = arith.constant 0 : i32
    %c0_i32_0 = arith.constant 0 : i32
    return %arg0, %c0_i32 : i32, i32
  }
}

</mosaic_0001>

<bundles_post_ra>
// kernel: tpu_custom_call.1
= control target key start
LH: loop header
LB: loop body
LE: loop exit
PB: predicated region body
PF: predicated region fallthrough
CT: control target
= control target key end

     0   :  { %12 = vsyncpa [#allocation3], 0  ;;  %s2296_s0 = inlined_call_operand.hbm [shape: f32[2,1024], index: 0, kind: input, shape index: {}]   ;;  %s2297_s1 = inlined_call_operand.hbm [shape: bf16[1024,256], index: 1, kind: input, shape index: {}]   ;;  %s2298_s2 = inlined_call_operand.vmem [shape: f32[1,256], index: 2, kind: input, shape index: {}]   ;;  %s2299_s3 = inlined_call_operand.hbm [shape: bf16[256,256], index: 3, kind: input, shape index: {}]   ;;  %s2300_s4 = inlined_call_operand.vmem [shape: f32[1,256], index: 4, kind: input, shape index: {}]   ;;  %s2301_s5 = inlined_call_operand.hbm [shape: bf16[256,128], index: 5, kind: input, shape index: {}]   ;;  %s2302_s6 = inlined_call_operand.vmem [shape: f32[1,128], index: 6, kind: input, shape index: {}]   ;;  %s2303_s7 = inlined_call_operand.hbm [shape: f32[2,8], index: 7, kind: output, shape index: {}]  }
   0x1   :  { %13 = vsyncpa [#allocation6], 0 }
   0x2   :  { %14 = vsyncpa [#allocation9], 0 }
   0x3   :  { %15 = vsyncpa [#allocation4], 0  ;;  %s2131_s24 = smov [#allocation5]   ;;  %s2013_s28 = scalar_lea.hbm %s2297_s1, 16384 }
   0x4   :  { %s31_s25 = sshll.u32 %s2131_s24, 4  ;;  %p2014_p0 = scmp.ne.s32.totalorder %s2297_s1, %s2013_s28  ;;  %s32_s25 = int_to_ptr.vmem [resolvable:$true] %s31_s25 }
   0x5   :  { %p2017_p1 = scmp.lt.u32.totalorder %s2013_s28, %s2297_s1 }
   0x7   :  { %p2019_p2 = pnand %p2017_p1, %p2014_p0 }
   0x9   :  { %2022 = shalt.err (!%p2019_p2)
}
   0xa   :  { %s2023_s10 = scalar_lea.vmem %s32_s25, 16384  ;;  %p2028_p4 = scmp.lt.s32.totalorder %s32_s25, %s32_s25 }
   0xb   :  { %p2024_p3 = scmp.ne.s32.totalorder %s32_s25, %s2023_s10  ;;  %p2029_p5 = scmp.lt.s32.totalorder %s2023_s10, %s2023_s10 }
   0xd   :  { %p2030_p6 = por %p2029_p5, %p2028_p4 }
   0xf   :  { %p2031_p7 = pnand %p2030_p6, %p2024_p3 }
  0x11   :  { %2034 = shalt.err (!%p2031_p7)
}
  0x12   :  { %s2132_s11 = smov 128   ;;  %s2133_s12 = smov 8  }
  0x13   :  { %37 = dma.hbm_to_vmem [thread:$0]  %s2297_s1, 16384, %s32_s25, [#allocation6], %s2132_s11, %s2132_s11, %s2133_s12  }
  0x14   :  { %s2134_s15 = smov [#allocation2]   ;;  %s2135_s17 = smov [#allocation7]  }
  0x15   :  { %s22_s16 = sshll.u32 %s2134_s15, 4  ;;  %s45_s18 = sshll.u32 %s2135_s17, 4  ;;  %s23_s16 = int_to_ptr.vmem [resolvable:$true] %s22_s16  ;;  %s46_s18 = int_to_ptr.vmem [resolvable:$true] %s45_s18 }
  0x16   :  { %s2035_s21 = scalar_lea.hbm %s2296_s0, 256 }
  0x17   :  { %p2036_p8 = scmp.ne.s32.totalorder %s2296_s0, %s2035_s21  ;;  %p2039_p9 = scmp.lt.u32.totalorder %s2035_s21, %s2296_s0 }
  0x19   :  { %p2041_p10 = pnand %p2039_p9, %p2036_p8 }
  0x1b   :  { %2044 = shalt.err (!%p2041_p10)
}
  0x1c   :  { %s2045_s1 = scalar_lea.vmem %s23_s16, 256  ;;  %p2050_p12 = scmp.lt.s32.totalorder %s23_s16, %s23_s16 }
  0x1d   :  { %p2046_p11 = scmp.ne.s32.totalorder %s23_s16, %s2045_s1  ;;  %p2051_p13 = scmp.lt.s32.totalorder %s2045_s1, %s2045_s1 }
  0x1f   :  { %p2052_p0 = por %p2051_p13, %p2050_p12 }
  0x21   :  { %p2053_p1 = pnand %p2052_p0, %p2046_p11 }
  0x23   :  { %2056 = shalt.err (!%p2053_p1)
}
  0x24   :  { %25 = dma.hbm_to_vmem [thread:$0]  %s2296_s0, 256, %s23_s16, [#allocation3]  }
  0x25   :  { %s2057_s30 = scalar_lea.hbm %s2299_s3, 4096 }
  0x26   :  { %p2058_p2 = scmp.ne.s32.totalorder %s2299_s3, %s2057_s30  ;;  %p2061_p3 = scmp.lt.u32.totalorder %s2057_s30, %s2299_s3 }
  0x28   :  { %p2063_p4 = pnand %p2061_p3, %p2058_p2 }
  0x2a   :  { %2066 = shalt.err (!%p2063_p4)
}
  0x2b   :  { %s2067_s14 = scalar_lea.vmem %s46_s18, 4096  ;;  %p2072_p6 = scmp.lt.s32.totalorder %s46_s18, %s46_s18 }
  0x2c   :  { %p2068_p5 = scmp.ne.s32.totalorder %s46_s18, %s2067_s14  ;;  %p2073_p7 = scmp.lt.s32.totalorder %s2067_s14, %s2067_s14 }
  0x2e   :  { %p2074_p8 = por %p2073_p7, %p2072_p6 }
  0x30   :  { %p2075_p9 = pnand %p2074_p8, %p2068_p5 }
  0x32   :  { %2078 = shalt.err (!%p2075_p9)
}
  0x33   :  { %51 = dma.hbm_to_vmem [thread:$0]  %s2299_s3, 4096, %s46_s18, [#allocation6], %s2132_s11, %s2132_s11, %s2133_s12  }
  0x34   :  { %s2136_s16 = smov [#allocation8]   ;;  %s2079_s21 = scalar_lea.hbm %s2301_s5, 2048 }
  0x35   :  { %s59_s17 = sshll.u32 %s2136_s16, 4  ;;  %p2080_p10 = scmp.ne.s32.totalorder %s2301_s5, %s2079_s21  ;;  %s60_s17 = int_to_ptr.vmem [resolvable:$true] %s59_s17 }
  0x36   :  { %p2083_p11 = scmp.lt.u32.totalorder %s2079_s21, %s2301_s5 }
  0x38   :  { %p2085_p12 = pnand %p2083_p11, %p2080_p10 }
  0x3a   :  { %2088 = shalt.err (!%p2085_p12)
}
  0x3b   :  { %s2089_s1 = scalar_lea.vmem %s60_s17, 2048  ;;  %p2094_p0 = scmp.lt.s32.totalorder %s60_s17, %s60_s17 }
  0x3c   :  { %p2090_p13 = scmp.ne.s32.totalorder %s60_s17, %s2089_s1  ;;  %p2095_p1 = scmp.lt.s32.totalorder %s2089_s1, %s2089_s1 }
  0x3e   :  { %p2096_p2 = por %p2095_p1, %p2094_p0 }
  0x40   :  { %p2097_p3 = pnand %p2096_p2, %p2090_p13 }
  0x42   :  { %2100 = shalt.err (!%p2097_p3)
}
  0x43   :  { %s2137_s3 = smov 64   ;;  %s2138_s11 = smov 4  }
  0x44   :  { %65 = dma.hbm_to_vmem [thread:$0]  %s2301_s5, 2048, %s60_s17, [#allocation9], %s2137_s3, %s2137_s3, %s2138_s11  }
  0x45   :  { %2123 = dma.done.wait [#allocation3], 256  }
  0x46   :  { %2124 = vsyncadd [#allocation3], 4294967040 }
  0x47   :  { %2125 = dma.done.wait [#allocation6], 20480  }
  0x48   :  { %2126 = vsyncadd [#allocation6], 4294946816 }
  0x49   :  { %2127 = dma.done.wait [#allocation9], 2048  }
  0x4a   :  { %2128 = vsyncadd [#allocation9], 4294965248  ;;  %v1747_v0 = vld [vmem:[#allocation5 + $0x104] ss:$8 sps:$4 sm:$0xff]   ;;  %v1749_v1 = vld [vmem:[#allocation5 + $0x100] ss:$8 sps:$4 sm:$0xff]   ;;  %v89_v11 = vlaneseq }
  0x4b   :  { %956 = vmatprep.subr.bf16.mxu0 %v1747_v0  ;;  %v1750_v2 = vld [vmem:[#allocation5 + $0x114] ss:$8 sps:$4 sm:$0xff]   ;;  %v1752_v3 = vld [vmem:[#allocation5 + $0x110] ss:$8 sps:$4 sm:$0xff]   ;;  %v1753_v4 = vld [vmem:[#allocation5 + $0x124] ss:$8 sps:$4 sm:$0xff]  }
  0x4c   :  { %957 = vmatpush1.bf16.msra.mxu0 %v1749_v1  ;;  %v1755_v5 = vld [vmem:[#allocation5 + $0x120] ss:$8 sps:$4 sm:$0xff]   ;;  %v1756_v6 = vld [vmem:[#allocation5 + $0x134] ss:$8 sps:$4 sm:$0xff]   ;;  %v1758_v7 = vld [vmem:[#allocation5 + $0x130] ss:$8 sps:$4 sm:$0xff]  }
  0x4d   :  { %958 = vmatprep.subr.bf16.mxu0 %v1750_v2  ;;  %v1759_v8 = vld [vmem:[#allocation5 + $0x144] ss:$8 sps:$4 sm:$0xff]   ;;  %v2139_v9 = vmov 1983009808   ;;  %v1761_v12 = vld [vmem:[#allocation5 + $0x140] ss:$8 sps:$4 sm:$0xff]  }
  0x4e   :  { %v87_v10 = vunpack.c.l.s4 %v2139_v9  ;;  %v1762_v13 = vld [vmem:[#allocation5 + $0x154] ss:$8 sps:$4 sm:$0xff]   ;;  %v2235_v15 = vshrl.u32 %v89_v11, 7  ;;  %v1764_v16 = vld [vmem:[#allocation5 + $0x150] ss:$8 sps:$4 sm:$0xff]   ;;  %vm1507_vm0 = vcmask 58368  }
  0x4f   :  { %v1765_v17 = vld [vmem:[#allocation5 + $0x164] ss:$8 sps:$4 sm:$0xff]   ;;  %v81_v19 = vld [vmem:[#allocation2] sm:$0xff]  ;;  %v1767_v21 = vld [vmem:[#allocation5 + $0x160] ss:$8 sps:$4 sm:$0xff]  }
  0x50   :  { %959 = vmatpush1.bf16.msra.mxu0 %v1752_v3  ;;  %v88_v14 = vunpack.c.0.s8 %v87_v10  ;;  %v85_v20 = vcombine.high %v81_v19, %v81_v19  ;;  %v1768_v22 = vld [vmem:[#allocation5 + $0x174] ss:$8 sps:$4 sm:$0xff]   ;;  %v1770_v25 = vld [vmem:[#allocation5 + $0x170] ss:$8 sps:$4 sm:$0xff]   ;;  %v1771_v26 = vld [vmem:[#allocation5 + $0x184] ss:$8 sps:$4 sm:$0xff]  }
  0x51   :  { %960 = vmatprep.subr.bf16.mxu0 %v1753_v4  ;;  %v1773_v28 = vld [vmem:[#allocation5 + $0x180] ss:$8 sps:$4 sm:$0xff]   ;;  %v1774_v29 = vld [vmem:[#allocation5 + $0x194] ss:$8 sps:$4 sm:$0xff]   ;;  %v1776_v30 = vld [vmem:[#allocation5 + $0x190] ss:$8 sps:$4 sm:$0xff]  }
  0x52   :  { %v2238_v18 = vsub.s32 %v88_v14, %v2235_v15  ;;  %v1777_v31 = vld [vmem:[#allocation5 + $0x1a4] ss:$8 sps:$4 sm:$0xff]   ;;  %v1779_v32 = vld [vmem:[#allocation5 + $0x1a0] ss:$8 sps:$4 sm:$0xff]   ;;  %v1780_v33 = vld [vmem:[#allocation5 + $0x1b4] ss:$8 sps:$4 sm:$0xff]  }
  0x53   :  { %v1841_v34 = vld [vmem:[#allocation5 + $0x4] ss:$8 sps:$4 sm:$0xff]   ;;  %v1843_v35 = vld [vmem:[#allocation5] ss:$8 sps:$4 sm:$0xff]   ;;  %v1782_v36 = vld [vmem:[#allocation5 + $0x1b0] ss:$8 sps:$4 sm:$0xff]  }
  0x54   :  { %961 = vmatpush1.bf16.msra.mxu0 %v1755_v5  ;;  %v2241_v23 = vrot.slane %v85_v20, %v2238_v18  ;;  %v1783_v37 = vld [vmem:[#allocation5 + $0x1c4] ss:$8 sps:$4 sm:$0xff]   ;;  %915 = vmatprep.subr.bf16.mxu1 %v1841_v34  ;;  %v1847_v38 = vld [vmem:[#allocation5 + $0x14] ss:$8 sps:$4 sm:$0xff]   ;;  %v1849_v39 = vld [vmem:[#allocation5 + $0x10] ss:$8 sps:$4 sm:$0xff]   ;;  %v2248_v50 = vrot.slane %v81_v19, %v2238_v18 }
  0x55   :  { %962 = vmatprep.subr.bf16.mxu0 %v1756_v6  ;;  %916 = vmatpush1.bf16.msra.mxu1 %v1843_v35  ;;  %v1785_v40 = vld [vmem:[#allocation5 + $0x1c0] ss:$8 sps:$4 sm:$0xff]   ;;  %v1786_v41 = vld [vmem:[#allocation5 + $0x1d4] ss:$8 sps:$4 sm:$0xff]   ;;  %v1853_v42 = vld [vmem:[#allocation5 + $0x24] ss:$8 sps:$4 sm:$0xff]  }
  0x56   :  { %v101_v24 = vcombine.high %v2241_v23, %v2241_v23  ;;  %917 = vmatprep.subr.bf16.mxu1 %v1847_v38  ;;  %v1855_v43 = vld [vmem:[#allocation5 + $0x20] ss:$8 sps:$4 sm:$0xff]   ;;  %v1859_v44 = vld [vmem:[#allocation5 + $0x34] ss:$8 sps:$4 sm:$0xff]   ;;  %v1788_v45 = vld [vmem:[#allocation5 + $0x1d0] ss:$8 sps:$4 sm:$0xff]   ;;  %v100_v54 = vcombine.high %v2248_v50, %v2248_v50  ;;  %v129_v62 = vpack.c.bf16 %v2241_v23, %v2241_v23 }
  0x57   :  { %v1789_v46 = vld [vmem:[#allocation5 + $0x1e4] ss:$8 sps:$4 sm:$0xff]   ;;  %v2245_v47 = vld [vmem:[#allocation2 + $0x8] sm:$0xff]  ;;  %v1791_v51 = vld [vmem:[#allocation5 + $0x1e0] ss:$8 sps:$4 sm:$0xff]  }
  0x58   :  { %963 = vmatpush1.bf16.msra.mxu0 %v1758_v7  ;;  %v130_v27 = vpack.c.bf16 %v101_v24, %v101_v24  ;;  %v1861_v48 = vld [vmem:[#allocation5 + $0x30] ss:$8 sps:$4 sm:$0xff]   ;;  %v1865_v49 = vld [vmem:[#allocation5 + $0x44] ss:$8 sps:$4 sm:$0xff]   ;;  %v2252_v52 = vrot.slane %v2245_v47, %v2238_v18  ;;  %v1792_v53 = vld [vmem:[#allocation5 + $0x1f4] ss:$8 sps:$4 sm:$0xff]   ;;  %v128_v57 = vpack.c.bf16 %v100_v54, %v100_v54 }
  0x59   :  { %964 = vmatprep.subr.bf16.mxu0 %v1759_v8  ;;  %918 = vmatpush1.bf16.msra.mxu1 %v1849_v39  ;;  %v1867_v55 = vld [vmem:[#allocation5 + $0x40] ss:$8 sps:$4 sm:$0xff]   ;;  %v1871_v56 = vld [vmem:[#allocation5 + $0x54] ss:$8 sps:$4 sm:$0xff]   ;;  %v1794_v58 = vld [vmem:[#allocation5 + $0x1f0] ss:$8 sps:$4 sm:$0xff]  }
  0x5a   :  { %988 = vmatprep.mubr.bf16.mxu0 %v130_v27  ;;  %919 = vmatprep.subr.bf16.mxu1 %v1853_v42  ;;  %v117_v59 = vcombine.high %v2252_v52, %v2252_v52  ;;  %v1798_v60 = vld [vmem:[#allocation5 + $0x204] ss:$8 sps:$4 sm:$0xff]   ;;  %v1873_v61 = vld [vmem:[#allocation5 + $0x50] ss:$8 sps:$4 sm:$0xff]   ;;  %v1796_v0 = vld [vmem:[#allocation5 + $0x200] ss:$8 sps:$4 sm:$0xff]  }
  0x5b   :  { %947 = vmatprep.mubr.bf16.mxu1 %v128_v57  ;;  %v1877_v63 = vld [vmem:[#allocation5 + $0x64] ss:$8 sps:$4 sm:$0xff]   ;;  %v1801_v2 = vld [vmem:[#allocation5 + $0x214] ss:$8 sps:$4 sm:$0xff]   ;;  %v1879_v3 = vld [vmem:[#allocation5 + $0x60] ss:$8 sps:$4 sm:$0xff]  }
  0x5c   :  { %965 = vmatpush1.bf16.msra.mxu0 %v1761_v12  ;;  %v132_v1 = vpack.c.bf16 %v117_v59, %v117_v59  ;;  %v1883_v4 = vld [vmem:[#allocation5 + $0x74] ss:$8 sps:$4 sm:$0xff]   ;;  %v1799_v5 = vld [vmem:[#allocation5 + $0x210] ss:$8 sps:$4 sm:$0xff]   ;;  %v1804_v6 = vld [vmem:[#allocation5 + $0x224] ss:$8 sps:$4 sm:$0xff]   ;;  %v102_v59 = vcombine.high %v2245_v47, %v2245_v47 }
  0x5d   :  { %966 = vmatprep.subr.bf16.mxu0 %v1762_v13  ;;  %920 = vmatpush1.bf16.msra.mxu1 %v1855_v43  ;;  %v1885_v7 = vld [vmem:[#allocation5 + $0x70] ss:$8 sps:$4 sm:$0xff]   ;;  %v1889_v8 = vld [vmem:[#allocation5 + $0x84] ss:$8 sps:$4 sm:$0xff]   ;;  %v1802_v9 = vld [vmem:[#allocation5 + $0x220] ss:$8 sps:$4 sm:$0xff]  }
  0x5e   :  { %921 = vmatprep.subr.bf16.mxu1 %v1859_v44  ;;  %v1807_v10 = vld [vmem:[#allocation5 + $0x234] ss:$8 sps:$4 sm:$0xff]   ;;  %v1891_v11 = vld [vmem:[#allocation5 + $0x80] ss:$8 sps:$4 sm:$0xff]   ;;  %v1805_v13 = vld [vmem:[#allocation5 + $0x230] ss:$8 sps:$4 sm:$0xff]  }
  0x5f   :  { %v1895_v12 = vld [vmem:[#allocation5 + $0x94] ss:$8 sps:$4 sm:$0xff]   ;;  %v1810_v14 = vld [vmem:[#allocation5 + $0x244] ss:$8 sps:$4 sm:$0xff]   ;;  %v1808_v19 = vld [vmem:[#allocation5 + $0x240] ss:$8 sps:$4 sm:$0xff]  }
  0x60   :  { %967 = vmatpush1.bf16.msra.mxu0 %v1764_v16  ;;  %v1897_v16 = vld [vmem:[#allocation5 + $0x90] ss:$8 sps:$4 sm:$0xff]   ;;  %v1813_v20 = vld [vmem:[#allocation5 + $0x254] ss:$8 sps:$4 sm:$0xff]   ;;  %v1816_v24 = vld [vmem:[#allocation5 + $0x264] ss:$8 sps:$4 sm:$0xff]  }
  0x61   :  { %968 = vmatprep.subr.bf16.mxu0 %v1765_v17  ;;  %922 = vmatpush1.bf16.msra.mxu1 %v1861_v48  ;;  %v1901_v17 = vld [vmem:[#allocation5 + $0xa4] ss:$8 sps:$4 sm:$0xff]   ;;  %v1811_v23 = vld [vmem:[#allocation5 + $0x250] ss:$8 sps:$4 sm:$0xff]   ;;  %v1814_v27 = vld [vmem:[#allocation5 + $0x260] ss:$8 sps:$4 sm:$0xff]  }
  0x62   :  { %923 = vmatprep.subr.bf16.mxu1 %v1865_v49  ;;  %v1925_v34 = vld [vmem:[#allocation5 + $0xe4] ss:$8 sps:$4 sm:$0xff]   ;;  %v1820_v35 = vld [vmem:[#allocation5 + $0x280] ss:$8 sps:$4 sm:$0xff]   ;;  %v1931_v38 = vld [vmem:[#allocation5 + $0xf4] ss:$8 sps:$4 sm:$0xff]  }
  0x63   :  { %v1823_v39 = vld [vmem:[#allocation5 + $0x290] ss:$8 sps:$4 sm:$0xff]   ;;  %v1943_v42 = vld [vmem:[#allocation7 + $0x4] ss:$8 sps:$4 sm:$0xff]   ;;  %v1826_v43 = vld [vmem:[#allocation5 + $0x2a0] ss:$8 sps:$4 sm:$0xff]  }
  0x64   :  { %969 = vmatpush1.bf16.msra.mxu0 %v1767_v21  ;;  %v1903_v21 = vld [vmem:[#allocation5 + $0xa0] ss:$8 sps:$4 sm:$0xff]   ;;  %v1831_v44 = vld [vmem:[#allocation5 + $0x2b4] ss:$8 sps:$4 sm:$0xff]   ;;  %v1829_v49 = vld [vmem:[#allocation5 + $0x2b0] ss:$8 sps:$4 sm:$0xff]  }
  0x65   :  { %970 = vmatprep.subr.bf16.mxu0 %v1768_v22  ;;  %924 = vmatpush1.bf16.msra.mxu1 %v1867_v55  ;;  %v1907_v22 = vld [vmem:[#allocation5 + $0xb4] ss:$8 sps:$4 sm:$0xff]   ;;  %v1949_v54 = vld [vmem:[#allocation7 + $0x24] ss:$8 sps:$4 sm:$0xff]   ;;  %v1832_v55 = vld [vmem:[#allocation5 + $0x2c0] ss:$8 sps:$4 sm:$0xff]  }
  0x66   :  { %925 = vmatprep.subr.bf16.mxu1 %v1871_v56  ;;  %v1946_v48 = vld [vmem:[#allocation7 + $0x14] ss:$8 sps:$4 sm:$0xff]   ;;  %v1947_v57 = vld [vmem:[#allocation7 + $0x20] ss:$8 sps:$4 sm:$0xff]  }
  0x67   :  { %v1837_v56 = vld [vmem:[#allocation5 + $0x2d4] ss:$8 sps:$4 sm:$0xff]  }
  0x68   :  { %971 = vmatpush1.bf16.msra.mxu0 %v1770_v25  ;;  %v1909_v25 = vld [vmem:[#allocation5 + $0xb0] ss:$8 sps:$4 sm:$0xff]  }
  0x69   :  { %972 = vmatprep.subr.bf16.mxu0 %v1771_v26  ;;  %926 = vmatpush1.bf16.msra.mxu1 %v1873_v61  ;;  %v1913_v26 = vld [vmem:[#allocation5 + $0xc4] ss:$8 sps:$4 sm:$0xff]   ;;  %v1950_v61 = vld [vmem:[#allocation7 + $0x30] ss:$8 sps:$4 sm:$0xff]  }
  0x6a   :  { %927 = vmatprep.subr.bf16.mxu1 %v1877_v63  ;;  %v1838_v63 = vld [vmem:[#allocation5 + $0x2e0] ss:$8 sps:$4 sm:$0xff]  }
  0x6c   :  { %973 = vmatpush1.bf16.msra.mxu0 %v1773_v28  ;;  %v1819_v28 = vld [vmem:[#allocation5 + $0x274] ss:$8 sps:$4 sm:$0xff]  }
  0x6d   :  { %974 = vmatprep.subr.bf16.mxu0 %v1774_v29  ;;  %928 = vmatpush1.bf16.msra.mxu1 %v1879_v3  ;;  %v1915_v29 = vld [vmem:[#allocation5 + $0xc0] ss:$8 sps:$4 sm:$0xff]   ;;  %v1958_v3 = vld [vmem:[#allocation7 + $0x54] ss:$8 sps:$4 sm:$0xff]  }
  0x6e   :  { %929 = vmatprep.subr.bf16.mxu1 %v1883_v4  ;;  %v1844_v4 = vld [vmem:[#allocation5 + $0x2f0] ss:$8 sps:$4 sm:$0xff]  }
  0x70   :  { %975 = vmatpush1.bf16.msra.mxu0 %v1776_v30  ;;  %v1919_v30 = vld [vmem:[#allocation5 + $0xd4] ss:$8 sps:$4 sm:$0xff]  }
  0x71   :  { %976 = vmatprep.subr.bf16.mxu0 %v1777_v31  ;;  %930 = vmatpush1.bf16.msra.mxu1 %v1885_v7  ;;  %v1817_v31 = vld [vmem:[#allocation5 + $0x270] ss:$8 sps:$4 sm:$0xff]   ;;  %v131_v7 = vpack.c.bf16 %v2252_v52, %v2252_v52  ;;  %v1967_v52 = vld [vmem:[#allocation7 + $0x84] ss:$8 sps:$4 sm:$0xff]  }
  0x72   :  { %931 = vmatprep.subr.bf16.mxu1 %v1889_v8  ;;  %v1850_v8 = vld [vmem:[#allocation5 + $0x300] ss:$8 sps:$4 sm:$0xff]  }
  0x74   :  { %977 = vmatpush1.bf16.msra.mxu0 %v1779_v32  ;;  %v1822_v32 = vld [vmem:[#allocation5 + $0x284] ss:$8 sps:$4 sm:$0xff]  }
  0x75   :  { %978 = vmatprep.subr.bf16.mxu0 %v1780_v33  ;;  %932 = vmatpush1.bf16.msra.mxu1 %v1891_v11  ;;  %v1921_v33 = vld [vmem:[#allocation5 + $0xd0] ss:$8 sps:$4 sm:$0xff]   ;;  %v1959_v11 = vld [vmem:[#allocation7 + $0x60] ss:$8 sps:$4 sm:$0xff]  }
  0x76   :  { %933 = vmatprep.subr.bf16.mxu1 %v1895_v12  ;;  %v1964_v12 = vld [vmem:[#allocation7 + $0x74] ss:$8 sps:$4 sm:$0xff]  }
  0x78   :  { %979 = vmatpush1.bf16.msra.mxu0 %v1782_v36  ;;  %v1825_v36 = vld [vmem:[#allocation5 + $0x294] ss:$8 sps:$4 sm:$0xff]  }
  0x79   :  { %980 = vmatprep.subr.bf16.mxu0 %v1783_v37  ;;  %934 = vmatpush1.bf16.msra.mxu1 %v1897_v16  ;;  %v1927_v37 = vld [vmem:[#allocation5 + $0xe0] ss:$8 sps:$4 sm:$0xff]   ;;  %v1962_v16 = vld [vmem:[#allocation7 + $0x70] ss:$8 sps:$4 sm:$0xff]  }
  0x7a   :  { %935 = vmatprep.subr.bf16.mxu1 %v1901_v17  ;;  %v1862_v17 = vld [vmem:[#allocation5 + $0x320] ss:$8 sps:$4 sm:$0xff]  }
  0x7c   :  { %981 = vmatpush1.bf16.msra.mxu0 %v1785_v40  ;;  %v1828_v40 = vld [vmem:[#allocation5 + $0x2a4] ss:$8 sps:$4 sm:$0xff]  }
  0x7d   :  { %982 = vmatprep.subr.bf16.mxu0 %v1786_v41  ;;  %936 = vmatpush1.bf16.msra.mxu1 %v1903_v21  ;;  %v1933_v41 = vld [vmem:[#allocation5 + $0xf0] ss:$8 sps:$4 sm:$0xff]   ;;  %v1970_v21 = vld [vmem:[#allocation7 + $0x94] ss:$8 sps:$4 sm:$0xff]  }
  0x7e   :  { %937 = vmatprep.subr.bf16.mxu1 %v1907_v22  ;;  %v1868_v22 = vld [vmem:[#allocation5 + $0x330] ss:$8 sps:$4 sm:$0xff]  }
  0x80   :  { %983 = vmatpush1.bf16.msra.mxu0 %v1788_v45  ;;  %v1941_v45 = vld [vmem:[#allocation7] ss:$8 sps:$4 sm:$0xff]  }
  0x81   :  { %984 = vmatprep.subr.bf16.mxu0 %v1789_v46  ;;  %938 = vmatpush1.bf16.msra.mxu1 %v1909_v25  ;;  %v127_v46 = vpack.c.bf16 %v2248_v50, %v2248_v50  ;;  %v1835_v50 = vld [vmem:[#allocation5 + $0x2d0] ss:$8 sps:$4 sm:$0xff]   ;;  %v1973_v25 = vld [vmem:[#allocation7 + $0xa4] ss:$8 sps:$4 sm:$0xff]  }
  0x82   :  { %939 = vmatprep.subr.bf16.mxu1 %v1913_v26  ;;  %v1874_v26 = vld [vmem:[#allocation5 + $0x340] ss:$8 sps:$4 sm:$0xff]  }
  0x84   :  { %985 = vmatpush1.bf16.msra.mxu0 %v1791_v51  ;;  %v1834_v51 = vld [vmem:[#allocation5 + $0x2c4] ss:$8 sps:$4 sm:$0xff]  }
  0x85   :  { %986 = vmatprep.subr.bf16.mxu0 %v1792_v53  ;;  %940 = vmatpush1.bf16.msra.mxu1 %v1915_v29  ;;  %v1944_v53 = vld [vmem:[#allocation7 + $0x10] ss:$8 sps:$4 sm:$0xff]  }
  0x86   :  { %941 = vmatprep.subr.bf16.mxu1 %v1919_v30  ;;  %v1880_v29 = vld [vmem:[#allocation5 + $0x350] ss:$8 sps:$4 sm:$0xff]   ;;  %v1888_v30 = vld [vmem:[#allocation5 + $0x364] ss:$8 sps:$4 sm:$0xff]  }
  0x88   :  { %987 = vmatpush1.bf16.msra.mxu0 %v1794_v58  ;;  %v1952_v58 = vld [vmem:[#allocation7 + $0x34] ss:$8 sps:$4 sm:$0xff]  }
  0x89   :  { %997 = vmatprep.subr.bf16.mxu0 %v1798_v60  ;;  %942 = vmatpush1.bf16.msra.mxu1 %v1921_v33  ;;  %v1840_v60 = vld [vmem:[#allocation5 + $0x2e4] ss:$8 sps:$4 sm:$0xff]   ;;  %v1892_v33 = vld [vmem:[#allocation5 + $0x370] ss:$8 sps:$4 sm:$0xff]  }
  0x8a   :  { %943 = vmatprep.subr.bf16.mxu1 %v1925_v34  ;;  %v1900_v34 = vld [vmem:[#allocation5 + $0x384] ss:$8 sps:$4 sm:$0xff]  }
  0x8b   :  { %989 = vmatmul.mubr.bf16.vlgmr.msra.gmra.mrb[0].mxu0 %v129_v62  ;;  %v1955_v62 = vld [vmem:[#allocation7 + $0x44] ss:$8 sps:$4 sm:$0xff]  }
  0x8c   :  { %998 = vmatpush1.bf16.msra.mxu0 %v1796_v0  ;;  %1029 = vmatprep.mubr.bf16.mxu0 %v132_v1  ;;  %v2265_v0 = vrot.slane %v102_v59, %v2238_v18  ;;  %v1846_v1 = vld [vmem:[#allocation5 + $0x2f4] ss:$8 sps:$4 sm:$0xff]   ;;  %v1961_v18 = vld [vmem:[#allocation7 + $0x64] ss:$8 sps:$4 sm:$0xff]  }
  0x8d   :  { %999 = vmatprep.subr.bf16.mxu0 %v1801_v2  ;;  %944 = vmatpush1.bf16.msra.mxu1 %v1927_v37  ;;  %v1953_v2 = vld [vmem:[#allocation7 + $0x40] ss:$8 sps:$4 sm:$0xff]   ;;  %v1904_v37 = vld [vmem:[#allocation5 + $0x390] ss:$8 sps:$4 sm:$0xff]   ;;  %v1985_v59 = vld [vmem:[#allocation7 + $0xe4] ss:$8 sps:$4 sm:$0xff]  }
  0x8e   :  { %945 = vmatprep.subr.bf16.mxu1 %v1931_v38  ;;  %v118_v47 = vcombine.high %v2265_v0, %v2265_v0  ;;  %v1912_v38 = vld [vmem:[#allocation5 + $0x3a4] ss:$8 sps:$4 sm:$0xff]  }
  0x90   :  { %1000 = vmatpush1.bf16.msra.mxu0 %v1799_v5  ;;  %v1852_v5 = vld [vmem:[#allocation5 + $0x304] ss:$8 sps:$4 sm:$0xff]  }
  0x91   :  { %1001 = vmatprep.subr.bf16.mxu0 %v1804_v6  ;;  %946 = vmatpush1.bf16.msra.mxu1 %v1933_v41  ;;  %v1956_v6 = vld [vmem:[#allocation7 + $0x50] ss:$8 sps:$4 sm:$0xff]  }
  0x92   :  { %1287 = vmatprep.subr.bf16.mxu1 %v1943_v42  ;;  %v1916_v41 = vld [vmem:[#allocation5 + $0x3b0] ss:$8 sps:$4 sm:$0xff]   ;;  %v1924_v42 = vld [vmem:[#allocation5 + $0x3c4] ss:$8 sps:$4 sm:$0xff]  }
  0x94   :  { %1002 = vmatpush1.bf16.msra.mxu0 %v1802_v9  ;;  %948 = vmatmul.mubr.bf16.vlgmr.msra.gmra.mrb[0].mxu1 %v127_v46  ;;  %v134_v9 = vpack.c.bf16 %v118_v47, %v118_v47  ;;  %v1936_v46 = vld [vmem:[#allocation5 + $0x3e4] ss:$8 sps:$4 sm:$0xff]   ;;  %v263_v47 = vld [vmem:[%s2298_s2] sm:$0x3] }
  0x95   :  { %1003 = vmatprep.subr.bf16.mxu0 %v1807_v10  ;;  %1288 = vmatpush1.bf16.msra.mxu1 %v1941_v45  ;;  %v1858_v10 = vld [vmem:[#allocation5 + $0x314] ss:$8 sps:$4 sm:$0xff]   ;;  %v1928_v45 = vld [vmem:[#allocation5 + $0x3d0] ss:$8 sps:$4 sm:$0xff]  }
  0x96   :  { %1289 = vmatprep.subr.bf16.mxu1 %v1946_v48  ;;  %v1934_v48 = vld [vmem:[#allocation5 + $0x3e0] ss:$8 sps:$4 sm:$0xff]  }
  0x98   :  { %1004 = vmatpush1.bf16.msra.mxu0 %v1805_v13  ;;  %v1856_v13 = vld [vmem:[#allocation5 + $0x310] ss:$8 sps:$4 sm:$0xff]  }
  0x99   :  { %1005 = vmatprep.subr.bf16.mxu0 %v1810_v14  ;;  %1290 = vmatpush1.bf16.msra.mxu1 %v1944_v53  ;;  %v1864_v14 = vld [vmem:[#allocation5 + $0x324] ss:$8 sps:$4 sm:$0xff]   ;;  %v133_v53 = vpack.c.bf16 %v2265_v0, %v2265_v0 }
  0x9a   :  { %1291 = vmatprep.subr.bf16.mxu1 %v1949_v54  ;;  %v1974_v54 = vld [vmem:[#allocation7 + $0xb0] ss:$8 sps:$4 sm:$0xff]  }
  0x9c   :  { %1006 = vmatpush1.bf16.msra.mxu0 %v1808_v19  ;;  %v1870_v19 = vld [vmem:[#allocation5 + $0x334] ss:$8 sps:$4 sm:$0xff]  }
  0x9d   :  { %1007 = vmatprep.subr.bf16.mxu0 %v1813_v20  ;;  %1292 = vmatpush1.bf16.msra.mxu1 %v1947_v57  ;;  %v1965_v20 = vld [vmem:[#allocation7 + $0x80] ss:$8 sps:$4 sm:$0xff]  }
  0x9e   :  { %1293 = vmatprep.subr.bf16.mxu1 %v1952_v58  ;;  %v1977_v57 = vld [vmem:[#allocation7 + $0xc0] ss:$8 sps:$4 sm:$0xff]   ;;  %v1982_v58 = vld [vmem:[#allocation7 + $0xd4] ss:$8 sps:$4 sm:$0xff]  }
  0xa0   :  { %1008 = vmatpush1.bf16.msra.mxu0 %v1811_v23  ;;  %v1876_v23 = vld [vmem:[#allocation5 + $0x344] ss:$8 sps:$4 sm:$0xff]  }
  0xa1   :  { %1009 = vmatprep.subr.bf16.mxu0 %v1816_v24  ;;  %1294 = vmatpush1.bf16.msra.mxu1 %v1950_v61  ;;  %v1968_v24 = vld [vmem:[#allocation7 + $0x90] ss:$8 sps:$4 sm:$0xff]   ;;  %v1988_v61 = vld [vmem:[#allocation7 + $0xf4] ss:$8 sps:$4 sm:$0xff]  }
  0xa2   :  { %1295 = vmatprep.subr.bf16.mxu1 %v1955_v62  ;;  %v1986_v62 = vld [vmem:[#allocation7 + $0xf0] ss:$8 sps:$4 sm:$0xff]  }
  0xa4   :  { %1010 = vmatpush1.bf16.msra.mxu0 %v1814_v27  ;;  %v1882_v27 = vld [vmem:[#allocation5 + $0x354] ss:$8 sps:$4 sm:$0xff]  }
  0xa5   :  { %1011 = vmatprep.subr.bf16.mxu0 %v1819_v28  ;;  %1296 = vmatpush1.bf16.msra.mxu1 %v1953_v2  ;;  %v1971_v28 = vld [vmem:[#allocation7 + $0xa0] ss:$8 sps:$4 sm:$0xff]  }
  0xa6   :  { %1297 = vmatprep.subr.bf16.mxu1 %v1958_v3 }
  0xa8   :  { %1012 = vmatpush1.bf16.msra.mxu0 %v1817_v31  ;;  %v1886_v31 = vld [vmem:[#allocation5 + $0x360] ss:$8 sps:$4 sm:$0xff]  }
  0xa9   :  { %1013 = vmatprep.subr.bf16.mxu0 %v1822_v32  ;;  %1298 = vmatpush1.bf16.msra.mxu1 %v1956_v6  ;;  %v1894_v32 = vld [vmem:[#allocation5 + $0x374] ss:$8 sps:$4 sm:$0xff]  }
  0xaa   :  { %1299 = vmatprep.subr.bf16.mxu1 %v1961_v18 }
  0xac   :  { %1014 = vmatpush1.bf16.msra.mxu0 %v1820_v35  ;;  %v1898_v35 = vld [vmem:[#allocation5 + $0x380] ss:$8 sps:$4 sm:$0xff]  }
  0xad   :  { %1015 = vmatprep.subr.bf16.mxu0 %v1825_v36  ;;  %1300 = vmatpush1.bf16.msra.mxu1 %v1959_v11  ;;  %v1906_v36 = vld [vmem:[#allocation5 + $0x394] ss:$8 sps:$4 sm:$0xff]  }
  0xae   :  { %1301 = vmatprep.subr.bf16.mxu1 %v1964_v12 }
  0xb0   :  { %1016 = vmatpush1.bf16.msra.mxu0 %v1823_v39  ;;  %v1910_v39 = vld [vmem:[#allocation5 + $0x3a0] ss:$8 sps:$4 sm:$0xff]  }
  0xb1   :  { %1017 = vmatprep.subr.bf16.mxu0 %v1828_v40  ;;  %1302 = vmatpush1.bf16.msra.mxu1 %v1962_v16  ;;  %v1918_v40 = vld [vmem:[#allocation5 + $0x3b4] ss:$8 sps:$4 sm:$0xff]  }
  0xb2   :  { %1303 = vmatprep.subr.bf16.mxu1 %v1967_v52 }
  0xb4   :  { %1018 = vmatpush1.bf16.msra.mxu0 %v1826_v43  ;;  %v1922_v43 = vld [vmem:[#allocation5 + $0x3c0] ss:$8 sps:$4 sm:$0xff]  }
  0xb5   :  { %1019 = vmatprep.subr.bf16.mxu0 %v1831_v44  ;;  %1304 = vmatpush1.bf16.msra.mxu1 %v1965_v20  ;;  %v1930_v44 = vld [vmem:[#allocation5 + $0x3d4] ss:$8 sps:$4 sm:$0xff]  }
  0xb6   :  { %1305 = vmatprep.subr.bf16.mxu1 %v1970_v21  ;;  %v1991_v21 = vld [vmem:[#allocation8 + $0x48] sm:$0xff]  }
  0xb8   :  { %1020 = vmatpush1.bf16.msra.mxu0 %v1829_v49  ;;  %v1939_v49 = vld [vmem:[#allocation5 + $0x3f4] ss:$8 sps:$4 sm:$0xff]  }
  0xb9   :  { %1021 = vmatprep.subr.bf16.mxu0 %v1834_v51  ;;  %1306 = vmatpush1.bf16.msra.mxu1 %v1968_v24  ;;  %v1937_v51 = vld [vmem:[#allocation5 + $0x3f0] ss:$8 sps:$4 sm:$0xff]  }
  0xba   :  { %1307 = vmatprep.subr.bf16.mxu1 %v1973_v25  ;;  %v1995_v24 = vld [vmem:[#allocation8 + $0x58] sm:$0xff]  }
  0xbb   :  { %v1996_v25 = vld [vmem:[#allocation8 + $0x18] sm:$0xff]  }
  0xbc   :  { %1022 = vmatpush1.bf16.msra.mxu0 %v1832_v55  ;;  %v1976_v55 = vld [vmem:[#allocation7 + $0xb4] ss:$8 sps:$4 sm:$0xff]  }
  0xbd   :  { %1023 = vmatprep.subr.bf16.mxu0 %v1837_v56  ;;  %1308 = vmatpush1.bf16.msra.mxu1 %v1971_v28  ;;  %v1979_v56 = vld [vmem:[#allocation7 + $0xc4] ss:$8 sps:$4 sm:$0xff]  }
  0xbe   :  { %1309 = vmatprep.subr.bf16.mxu1 %v1976_v55  ;;  %v1999_v28 = vld [vmem:[#allocation8 + $0x68] sm:$0xff]  }
  0xc0   :  { %1024 = vmatpush1.bf16.msra.mxu0 %v1835_v50  ;;  %v1980_v50 = vld [vmem:[#allocation7 + $0xd0] ss:$8 sps:$4 sm:$0xff]  }
  0xc1   :  { %1025 = vmatprep.subr.bf16.mxu0 %v1840_v60  ;;  %1310 = vmatpush1.bf16.msra.mxu1 %v1974_v54  ;;  %v1983_v60 = vld [vmem:[#allocation7 + $0xe0] ss:$8 sps:$4 sm:$0xff]  }
  0xc2   :  { %1311 = vmatprep.subr.bf16.mxu1 %v1979_v56 }
  0xc4   :  { %1026 = vmatpush1.bf16.msra.mxu0 %v1838_v63  ;;  %v1989_v63 = vld [vmem:[#allocation8 + $0x40] sm:$0xff]  }
  0xc5   :  { %1027 = vmatprep.subr.bf16.mxu0 %v1846_v1  ;;  %1312 = vmatpush1.bf16.msra.mxu1 %v1977_v57 }
  0xc6   :  { %1313 = vmatprep.subr.bf16.mxu1 %v1982_v58 }
  0xc8   :  { %1028 = vmatpush1.bf16.msra.mxu0 %v1844_v4  ;;  %v267_v4 = vsub.s32 0, %v2235_v15 }
  0xc9   :  { %1038 = vmatprep.subr.bf16.mxu0 %v1852_v5  ;;  %1314 = vmatpush1.bf16.msra.mxu1 %v1980_v50  ;;  %v271_v5 = vsub.s32 1, %v2235_v15  ;;  %v1992_v15 = vld [vmem:[#allocation8 + $0x8] sm:$0xff]  }
  0xca   :  { %1315 = vmatprep.subr.bf16.mxu1 %v1985_v59  ;;  %v268_v6 = vrot.slane %v263_v47, %v267_v4 }
  0xcb   :  { %1030 = vmatmul.mubr.bf16.vlgmr.msra.gmra.mrb[0].mxu0 %v131_v7  ;;  %v272_v7 = vrot.slane %v263_v47, %v271_v5 }
  0xcc   :  { %1039 = vmatpush1.bf16.msra.mxu0 %v1850_v8  ;;  %1070 = vmatprep.mubr.bf16.mxu0 %v134_v9 }
  0xcd   :  { %1040 = vmatprep.subr.bf16.mxu0 %v1858_v10  ;;  %1316 = vmatpush1.bf16.msra.mxu1 %v1983_v60 }
  0xce   :  { %1317 = vmatprep.subr.bf16.mxu1 %v1988_v61 }
  0xd0   :  { %1041 = vmatpush1.bf16.msra.mxu0 %v1856_v13 }
  0xd1   :  { %1042 = vmatprep.subr.bf16.mxu0 %v1864_v14  ;;  %1318 = vmatpush1.bf16.msra.mxu1 %v1986_v62 }
  0xd2   :  { %1703 = vmatprep.subr.bf16.mxu1 %v1989_v63 }
  0xd4   :  { %1043 = vmatpush1.bf16.msra.mxu0 %v1862_v17 }
  0xd5   :  { %1044 = vmatprep.subr.bf16.mxu0 %v1870_v19  ;;  %v1990_v19 = vld [vmem:[#allocation8] sm:$0xff]  }
  0xd8   :  { %1045 = vmatpush1.bf16.msra.mxu0 %v1868_v22  ;;  %v1993_v22 = vld [vmem:[#allocation8 + $0x50] sm:$0xff]  }
  0xd9   :  { %1046 = vmatprep.subr.bf16.mxu0 %v1876_v23  ;;  %v1994_v23 = vld [vmem:[#allocation8 + $0x10] sm:$0xff]  }
  0xdc   :  { %1047 = vmatpush1.bf16.msra.mxu0 %v1874_v26  ;;  %v1997_v26 = vld [vmem:[#allocation8 + $0x60] sm:$0xff]  }
  0xdd   :  { %1048 = vmatprep.subr.bf16.mxu0 %v1882_v27  ;;  %v1998_v27 = vld [vmem:[#allocation8 + $0x20] sm:$0xff]  }
  0xe0   :  { %1049 = vmatpush1.bf16.msra.mxu0 %v1880_v29  ;;  %v2000_v29 = vld [vmem:[#allocation8 + $0x28] sm:$0xff]  }
  0xe1   :  { %1050 = vmatprep.subr.bf16.mxu0 %v1888_v30  ;;  %v2001_v30 = vld [vmem:[#allocation8 + $0x70] sm:$0xff]  }
  0xe4   :  { %1051 = vmatpush1.bf16.msra.mxu0 %v1886_v31  ;;  %v2002_v31 = vld [vmem:[#allocation8 + $0x30] sm:$0xff]  }
  0xe5   :  { %1052 = vmatprep.subr.bf16.mxu0 %v1894_v32  ;;  %v2003_v32 = vld [vmem:[#allocation8 + $0x78] sm:$0xff]  }
  0xe8   :  { %1053 = vmatpush1.bf16.msra.mxu0 %v1892_v33  ;;  %v2004_v33 = vld [vmem:[#allocation8 + $0x38] sm:$0xff]  }
  0xe9   :  { %1054 = vmatprep.subr.bf16.mxu0 %v1900_v34  ;;  %v1115_v34 = vld [vmem:[%s2300_s4] sm:$0x3]  ;;  %s2140_s4 = smov [#allocation10]  }
  0xea   :  { %s1515_s30 = sshll.u32 %s2140_s4, 4  ;;  %s1516_s30 = int_to_ptr.vmem [resolvable:$true] %s1515_s30 }
  0xeb   :  { %s2101_s8 = scalar_lea.vmem %s1516_s30, 32  ;;  %p2106_p5 = scmp.lt.s32.totalorder %s1516_s30, %s1516_s30 }
  0xec   :  { %1055 = vmatpush1.bf16.msra.mxu0 %v1898_v35  ;;  %v1120_v35 = vrot.slane %v1115_v34, %v267_v4  ;;  %p2102_p4 = scmp.ne.s32.totalorder %s1516_s30, %s2101_s8  ;;  %p2107_p6 = scmp.lt.s32.totalorder %s2101_s8, %s2101_s8 }
  0xed   :  { %1056 = vmatprep.subr.bf16.mxu0 %v1906_v36  ;;  %v1124_v36 = vrot.slane %v1115_v34, %v271_v5 }
  0xee   :  { %p2108_p7 = por %p2107_p6, %p2106_p5 }
  0xf0   :  { %1057 = vmatpush1.bf16.msra.mxu0 %v1904_v37  ;;  %p2109_p8 = pnand %p2108_p7, %p2102_p4 }
  0xf1   :  { %1058 = vmatprep.subr.bf16.mxu0 %v1912_v38 }
  0xf4   :  { %1059 = vmatpush1.bf16.msra.mxu0 %v1910_v39 }
  0xf5   :  { %1060 = vmatprep.subr.bf16.mxu0 %v1918_v40 }
  0xf8   :  { %1061 = vmatpush1.bf16.msra.mxu0 %v1916_v41 }
  0xf9   :  { %1062 = vmatprep.subr.bf16.mxu0 %v1924_v42 }
  0xfc   :  { %1063 = vmatpush1.bf16.msra.mxu0 %v1922_v43 }
  0xfd   :  { %1064 = vmatprep.subr.bf16.mxu0 %v1930_v44 }
 0x100   :  { %1065 = vmatpush1.bf16.msra.mxu0 %v1928_v45 }
 0x101   :  { %1066 = vmatprep.subr.bf16.mxu0 %v1936_v46 }
 0x104   :  { %1067 = vmatpush1.bf16.msra.mxu0 %v1934_v48 }
 0x105   :  { %1068 = vmatprep.subr.bf16.mxu0 %v1939_v49  ;;  %v1686_v49 = vld [vmem:[%s2302_s6] ss:$0 sm:$0xff] }
 0x108   :  { %1069 = vmatpush1.bf16.msra.mxu0 %v1937_v51 }
 0x10b   :  { %1071 = vmatmul.mubr.bf16.vlgmr.msra.gmra.mrb[0].mxu0 %v133_v53 }
 0x167   :  { %v949_v0 = vpop.f32.mrb[0].mxu1 }
 0x168   :  { %v951_v1 = vpop.f32.mrb[1].mxu1  ;;  %v950_v18 = vadd.f32 %v949_v0, %v268_v6 }
 0x169   :  { %v953_v2 = vpop.f32.mrb[2].mxu1  ;;  %v952_v8 = vadd.f32 %v951_v1, %v272_v7 }
 0x16a   :  { %v954_v3 = vpop.f32.mrb[3].mxu1 }
 0x1de   :  { %v1072_v9 = vpop.f32.mrb[0].mxu0 }
 0x1df   :  { %v1726_v10 = vadd.f32 %v1072_v9, %v950_v18  ;;  %v1074_v11 = vpop.f32.mrb[1].mxu0 }
 0x1e0   :  { %v1728_v12 = vadd.f32 %v1074_v11, %v952_v8  ;;  %v1076_v13 = vpop.f32.mrb[2].mxu0 }
 0x1e1   :  { %2005 = vtanh.f32 %v1726_v10  ;;  %v1077_v14 = vpop.f32.mrb[3].mxu0 }
 0x1e2   :  { %2007 = vtanh.f32 %v1728_v12 }
 0x1eb   :  { %v2006_v16 = vpop.eup %2005 }
 0x1ec   :  { %v2008_v52 = vpop.eup %2007  ;;  %v1081_v20 = vpack.c.bf16 %v2006_v16, %v2006_v16 }
 0x1ed   :  { %v1082_v17 = vpack.c.bf16 %v2008_v52, %v2008_v52 }
 0x1ef   :  { %1319 = vmatprep.mubr.bf16.mxu1 %v1082_v17 }
 0x1f0   :  { %1320 = vmatmul.mubr.bf16.vlgmr.msra.gmra.mrb[4].mxu1 %v1081_v20 }
 0x1f1   :  { %1704 = vmatpush3.bf16.msra.mxu1 %v1990_v19 }
 0x1f2   :  { %1705 = vmatprep.subr.bf16.mxu1 %v1991_v21 }
 0x1f5   :  { %1706 = vmatpush3.bf16.msra.mxu1 %v1992_v15 }
 0x1f6   :  { %1707 = vmatprep.subr.bf16.mxu1 %v1993_v22 }
 0x1f9   :  { %1708 = vmatpush3.bf16.msra.mxu1 %v1994_v23 }
 0x1fa   :  { %1709 = vmatprep.subr.bf16.mxu1 %v1995_v24 }
 0x1fd   :  { %1710 = vmatpush3.bf16.msra.mxu1 %v1996_v25 }
 0x1fe   :  { %1711 = vmatprep.subr.bf16.mxu1 %v1997_v26 }
 0x201   :  { %1712 = vmatpush3.bf16.msra.mxu1 %v1998_v27 }
 0x202   :  { %1713 = vmatprep.subr.bf16.mxu1 %v1999_v28 }
 0x205   :  { %1714 = vmatpush3.bf16.msra.mxu1 %v2000_v29 }
 0x206   :  { %1715 = vmatprep.subr.bf16.mxu1 %v2001_v30 }
 0x209   :  { %1716 = vmatpush3.bf16.msra.mxu1 %v2002_v31 }
 0x20a   :  { %1717 = vmatprep.subr.bf16.mxu1 %v2003_v32 }
 0x20d   :  { %1718 = vmatpush3.bf16.msra.mxu1 %v2004_v33 }
 0x2c3   :  { %v1321_v37 = vpop.f32.mrb[4].mxu1 }
 0x2c4   :  { %v1322_v38 = vadd.f32 %v1321_v37, %v1120_v35  ;;  %v1323_v39 = vpop.f32.mrb[5].mxu1 }
 0x2c5   :  { %v1324_v40 = vadd.f32 %v1323_v39, %v1124_v36  ;;  %v1325_v41 = vpop.f32.mrb[6].mxu1 }
 0x2c6   :  { %2009 = vtanh.f32 %v1322_v38  ;;  %v1326_v42 = vpop.f32.mrb[7].mxu1 }
 0x2c7   :  { %2011 = vtanh.f32 %v1324_v40 }
 0x2d0   :  { %v2010_v43 = vpop.eup %2009 }
 0x2d1   :  { %v2012_v44 = vpop.eup %2011  ;;  %v1330_v46 = vpack.c.bf16 %v2010_v43, %v2010_v43 }
 0x2d2   :  { %v1331_v45 = vpack.c.bf16 %v2012_v44, %v2012_v44 }
 0x2d4   :  { %1499 = vmatprep.mubr.bf16.mxu1 %v1331_v45 }
 0x2d5   :  { %1500 = vmatmul.mubr.bf16.vlgmr.msra.gmra.mrb[8].mxu1 %v1330_v46 }
 0x3a8   :  { %v1719_v48 = vpop.f32.mrb[8].mxu1 }
 0x3a9   :  { %v1720_v51 = vpop.f32.mrb[9].mxu1 }
 0x3aa   :  { %v1721_v53 = vadd.f32 %v1720_v51, %v1719_v48  ;;  %v1722_v54 = vpop.f32.mrb[10].mxu1 }
 0x3ab   :  { %v1723_v55 = vpop.f32.mrb[11].mxu1 }
 0x3ac   :  { %v1502_v56 = vadd.f32 %v1721_v53, %v1686_v49 }
 0x3ae   :  { %1508 = vst.msk [vmem:[#allocation10] sm:$0x3] %vm1507_vm0, %v1502_v56 }
 0x3af   :  { %2112 = shalt.err (!%p2109_p8)
}
 0x3b0   :  { %s2113_s6 = scalar_lea.hbm %s2303_s7, 32 }
 0x3b1   :  { %p2114_p9 = scmp.ne.s32.totalorder %s2303_s7, %s2113_s6  ;;  %p2117_p10 = scmp.lt.u32.totalorder %s2113_s6, %s2303_s7 }
 0x3b3   :  { %p2119_p11 = pnand %p2117_p10, %p2114_p9 }
 0x3b5   :  { %2122 = shalt.err (!%p2119_p11)
}
 0x3b6   :  { %1518 = dma.vmem_to_hbm [thread:$0]  %s1516_s30, 32, %s2303_s7, [#allocation4]  }
 0x3b7   :  { %2129 = dma.done.wait [#allocation4], 32  }
 0x3b8   :  { %2130 = vsyncadd [#allocation4], 4294967264 }
 0x3b9   :  { %1522 = vsyncpa [#allocation3], 1 }
 0x3ba   :  { %1523 = vsyncpa [#allocation6], 1 }
 0x3bb   :  { %1524 = vsyncpa [#allocation9], 1 }
 0x3bc   :  { %1525 = vsyncpa [#allocation4], 1 }

</bundles_post_ra>
